<compile_context>
chip_gen: v5e
topology: v5e:2x2
jax: 0.10.0
libtpu: 0.0.40
codegen_flags: <defaults>
</compile_context>

<pallas_src>
import math
import jax
import jax.numpy as jnp
from jax.experimental import pallas as pl
from jax.experimental.pallas import tpu as pltpu

# ------------------------------ config (small) ------------------------------
B = 2            # batch_size
D = 32           # connector_dim
NH = 4           # num_heads
DK = D // NH     # 8
DV = D // NH     # 8
L = 16           # sequence length
BD = B * D       # 64 : merged (batch, channel) row dim

F32 = jnp.float32
BF16 = jnp.bfloat16
_SCALE = 1.0 / math.sqrt(DK)


# --------------------------- fused attention kernel --------------------------
def _self_attention_kernel(x_ref, w_ref, o_ref, head_ref):
    # x_ref:    (B*D, L)   f32
    # w_ref:    (4*B*D, B*D) bf16  = [Q_bd; K_bd; V_bd; Wo_bd] (block-diag over batch)
    # o_ref:    (B*D, L)   f32
    # head_ref: (B*D, L)   f32 VMEM scratch (head slab, natural head order)
    x = x_ref[...].astype(BF16)                              # one cheap cast (1 vreg)

    w_qkv = w_ref[pl.ds(0, 3 * BD), :]                       # (192, 64) bf16
    w_o = w_ref[pl.ds(3 * BD, BD), :]                        # (64, 64)  bf16

    # ONE fat MXU matmul: Q, K, V for every batch element at once.
    # (1/sqrt(DK) already folded into the Wq rows at pack time.)
    proj = jnp.dot(w_qkv, x, preferred_element_type=F32)     # (192, 16) f32

    for b in range(B):                                        # static 2x4 unroll;
        for h in range(NH):                                   # iterations independent
            r = b * D + h * DK                                # multiple of 8 -> aligned
            qh = proj[r:r + DK, :]                            # (DK, L), pre-scaled
            kh = proj[BD + r:BD + r + DK, :]                  # (DK, L)
            vh = proj[2 * BD + r:2 * BD + r + DK, :]          # (DV, L)
            # scores[i, j] = sum_d q[d, i] * k[d, j]  == bmm(Q^T, K) * 1/sqrt(dk)
            s = jax.lax.dot_general(qh, kh, (((0,), (0,)), ((), ())),
                                    preferred_element_type=F32)   # (L, L)
            # torch F.softmax(dim=1) on (B, L, L)  ==  softmax over axis 0 here (f32).
            m = jnp.max(s, axis=0, keepdims=True)
            e = jnp.exp(s - m)
            p = e * pl.reciprocal(jnp.sum(e, axis=0, keepdims=True), approx=True)
            # head[d, j] = sum_i v[d, i] * p[i, j]  == bmm(V, p); write straight
            # into the sublane-aligned f32 scratch slab (no functional concat).
            head_ref[pl.ds(r, DV), :] = jnp.dot(vh, p, preferred_element_type=F32)

    # ONE fused output projection for both batches; the reversed torch head
    # order (list.pop()) is folded into the Wo column permutation at pack time.
    head = head_ref[...].astype(BF16)                         # (64, 16)
    o_ref[...] = jnp.dot(w_o, head, preferred_element_type=F32).astype(o_ref.dtype)


# ------------------------ one-time weight packing (cold path) -----------------
def pack_weights(wqs, wks, wvs, wo):
    """Runs ONCE outside the per-call hot path.

    Returns a single (4*B*D, B*D) bf16 array:
      rows [0:BD)      blockdiag over batch of (Wq stacked over heads) * 1/sqrt(DK)
      rows [BD:2BD)    blockdiag of stacked Wk
      rows [2BD:3BD)   blockdiag of stacked Wv
      rows [3BD:4BD)   blockdiag of Wo with columns permuted for natural head order
    """
    wq = jnp.concatenate(wqs, axis=1) * _SCALE               # (B, D, D)
    wk = jnp.concatenate(wks, axis=1)                        # (B, D, D)
    wv = jnp.concatenate(wvs, axis=1)                        # (B, D, D)
    # torch concatenates heads in reversed pop() order; permute Wo columns so the
    # kernel can use natural head order.
    wo_perm = jnp.concatenate(
        [wo[:, :, (NH - 1 - h) * DV:(NH - h) * DV] for h in range(NH)], axis=2)

    def blockdiag(w):                                        # (B, D, D) -> (B*D, B*D)
        m = jnp.zeros((BD, BD), F32)
        for b in range(B):
            m = m.at[b * D:(b + 1) * D, b * D:(b + 1) * D].set(w[b])
        return m

    w_all = jnp.concatenate(
        [blockdiag(wq), blockdiag(wk), blockdiag(wv), blockdiag(wo_perm)], axis=0)
    return w_all.astype(BF16)                                # (256, 64)


# ------------------------------ jitted hot path -------------------------------
@jax.jit
def self_attention(x, w_all):
    """x: (B, D, L) f32; w_all: packed bf16 weights from pack_weights()."""
    x_flat = x.reshape(BD, L)                                # free major-dim merge
    vmem = pl.BlockSpec(memory_space=pltpu.MemorySpace.VMEM)
    out_flat = pl.pallas_call(
        _self_attention_kernel,
        out_shape=jax.ShapeDtypeStruct((BD, L), F32),
        in_specs=[vmem, vmem],
        out_specs=vmem,
        scratch_shapes=[pltpu.VMEM((BD, L), F32)],
    )(x_flat, w_all)
    return out_flat.reshape(B, D, L)


# ------------------------ pure-JAX reference (torch spec) --------------------
def self_attention_ref(x, wqs, wks, wvs, wo):
    """Direct transcription of the PyTorch forward (including reversed pop() order)."""
    sqrt_dk_inv = 1.0 / math.sqrt(DK)
    WQs = [jnp.einsum('bkd,bdl->bkl', wqs[i], x) for i in range(NH)]
    WKs = [jnp.einsum('bkd,bdl->bkl', wks[i], x) for i in range(NH)]
    WVs = [jnp.einsum('bvd,bdl->bvl', wvs[i], x) for i in range(NH)]
    heads = []
    for _ in range(NH):
        q = WQs.pop(); k = WKs.pop(); v = WVs.pop()
        s = jnp.einsum('bdi,bdj->bij', q, k) * sqrt_dk_inv   # bmm(Q^T, K) * 1/sqrt(dk)
        p = jax.nn.softmax(s, axis=1)                        # F.softmax(dim=1)
        heads.append(jnp.einsum('bdi,bij->bdj', v, p))       # bmm(V, p)
    head = jnp.concatenate(heads, axis=1)                    # cat(dim=1)
    return jnp.einsum('bde,bel->bdl', wo, head)              # bmm(Wo, head)


# ------------------------------------ main -----------------------------------
if __name__ == "__main__":
    key = jax.random.PRNGKey(0)
    ks = list(jax.random.split(key, 3 * NH + 2))

    def nrm(k, shape, std):
        return std * jax.random.normal(k, shape, dtype=F32)

    # xavier_normal_-like scales (exact init scale is irrelevant to correctness)
    std_qkv = math.sqrt(2.0 / (D + DK))
    std_o = math.sqrt(2.0 / (DV * NH + D))

    wqs = [nrm(ks.pop(), (B, DK, D), std_qkv) for _ in range(NH)]
    wks = [nrm(ks.pop(), (B, DK, D), std_qkv) for _ in range(NH)]
    wvs = [nrm(ks.pop(), (B, DV, D), std_qkv) for _ in range(NH)]
    wo = nrm(ks.pop(), (B, DV * NH, D), std_o)
    x = jax.random.normal(ks.pop(), (B, D, L), dtype=F32)

    # Weight packing happens once, outside the jitted per-call path.
    w_all = jax.block_until_ready(pack_weights(wqs, wks, wvs, wo))

    out = jax.block_until_ready(self_attention(x, w_all))
    ref = self_attention_ref(x, wqs, wks, wvs, wo)

    assert out.shape == (B, DV * NH, L)
    assert bool(jnp.all(jnp.isfinite(out)))
    # tolerance covers bf16 MXU operands (f32 accumulation) and the EUP
    # approximate reciprocal in the softmax denominator
    assert bool(jnp.allclose(out, ref, rtol=3e-2, atol=3e-2))
    print("KERNEL_OK")
</pallas_src>

<mosaic_0001>
module attributes {stable_mosaic.version = 11 : i64} {
  func.func @_self_attention_kernel(%arg0: memref<64x16xf32, #tpu.memory_space<vmem>>, %arg1: memref<256x64xbf16, #tpu.memory_space<vmem>>, %arg2: memref<64x16xf32, #tpu.memory_space<vmem>>, %arg3: memref<64x16xf32, #tpu.memory_space<vmem>>) attributes {dimension_semantics = [], scalar_prefetch = 0 : i64, scratch_operands = 1 : i64, tpu.core_type = #tpu.core_type<tc>} {
    %c0 = arith.constant 0 : index
    %c0_0 = arith.constant 0 : index
    %0 = vector.load %arg0[%c0, %c0_0] : memref<64x16xf32, #tpu.memory_space<vmem>>, vector<64x16xf32>
    %1 = arith.truncf %0 : vector<64x16xf32> to vector<64x16xbf16>
    %c0_1 = arith.constant 0 : index
    %c0_2 = arith.constant 0 : index
    %2 = vector.load %arg1[%c0_1, %c0_2] : memref<256x64xbf16, #tpu.memory_space<vmem>>, vector<192x64xbf16>
    %c192 = arith.constant 192 : index
    %c0_3 = arith.constant 0 : index
    %3 = vector.load %arg1[%c192, %c0_3] : memref<256x64xbf16, #tpu.memory_space<vmem>>, vector<64x64xbf16>
    %cst = arith.constant dense<0.000000e+00> : vector<192x16xf32>
    %4 = tpu.matmul %2, %1, %cst {dimension_numbers = #tpu.dot_dimension_numbers<[1], [0], [0], [1], [0, 0, 1, 1], [], []>} : vector<192x64xbf16>, vector<64x16xbf16>, vector<192x16xf32> -> vector<192x16xf32>
    %5 = vector.extract_strided_slice %4 {offsets = [0, 0], sizes = [8, 16], strides = [1, 1]} : vector<192x16xf32> to vector<8x16xf32>
    %6 = vector.extract_strided_slice %4 {offsets = [64, 0], sizes = [8, 16], strides = [1, 1]} : vector<192x16xf32> to vector<8x16xf32>
    %7 = vector.extract_strided_slice %4 {offsets = [128, 0], sizes = [8, 16], strides = [1, 1]} : vector<192x16xf32> to vector<8x16xf32>
    %cst_4 = arith.constant dense<0.000000e+00> : vector<16x16xf32>
    %8 = tpu.matmul %5, %6, %cst_4 {dimension_numbers = #tpu.dot_dimension_numbers<[0], [0], [1], [1], [0, 1, 1, 1], [], []>} : vector<8x16xf32>, vector<8x16xf32>, vector<16x16xf32> -> vector<16x16xf32>
    %cst_5 = arith.constant dense<0xFF800000> : vector<16xf32>
    %9 = vector.multi_reduction <maximumf>, %8, %cst_5 [0] : vector<16x16xf32> to vector<16xf32>
    %10 = vector.shape_cast %9 : vector<16xf32> to vector<1x16xf32>
    %11 = vector.broadcast %10 : vector<1x16xf32> to vector<16x16xf32>
    %12 = arith.subf %8, %11 : vector<16x16xf32>
    %13 = math.exp %12 : vector<16x16xf32>
    %cst_6 = arith.constant dense<0.000000e+00> : vector<16xf32>
    %14 = vector.multi_reduction <add>, %13, %cst_6 [0] : vector<16x16xf32> to vector<16xf32>
    %15 = vector.shape_cast %14 : vector<16xf32> to vector<1x16xf32>
    %16 = tpu.reciprocal %15 {approx = true} : vector<1x16xf32> -> vector<1x16xf32>
    %17 = vector.broadcast %16 : vector<1x16xf32> to vector<16x16xf32>
    %18 = arith.mulf %13, %17 : vector<16x16xf32>
    %cst_7 = arith.constant dense<0.000000e+00> : vector<8x16xf32>
    %19 = tpu.matmul %7, %18, %cst_7 {dimension_numbers = #tpu.dot_dimension_numbers<[1], [0], [0], [1], [0, 0, 1, 1], [], []>} : vector<8x16xf32>, vector<16x16xf32>, vector<8x16xf32> -> vector<8x16xf32>
    %c0_8 = arith.constant 0 : index
    %c0_9 = arith.constant 0 : index
    %20 = vector.load %arg3[%c0_8, %c0_9] : memref<64x16xf32, #tpu.memory_space<vmem>>, vector<8x16xf32>
    tpu.vector_store %arg3[%c0_8, %c0_9], %19 {strides = array<i32>} : memref<64x16xf32, #tpu.memory_space<vmem>>, vector<8x16xf32>,
    %21 = vector.extract_strided_slice %4 {offsets = [8, 0], sizes = [8, 16], strides = [1, 1]} : vector<192x16xf32> to vector<8x16xf32>
    %22 = vector.extract_strided_slice %4 {offsets = [72, 0], sizes = [8, 16], strides = [1, 1]} : vector<192x16xf32> to vector<8x16xf32>
    %23 = vector.extract_strided_slice %4 {offsets = [136, 0], sizes = [8, 16], strides = [1, 1]} : vector<192x16xf32> to vector<8x16xf32>
    %cst_10 = arith.constant dense<0.000000e+00> : vector<16x16xf32>
    %24 = tpu.matmul %21, %22, %cst_10 {dimension_numbers = #tpu.dot_dimension_numbers<[0], [0], [1], [1], [0, 1, 1, 1], [], []>} : vector<8x16xf32>, vector<8x16xf32>, vector<16x16xf32> -> vector<16x16xf32>
    %cst_11 = arith.constant dense<0xFF800000> : vector<16xf32>
    %25 = vector.multi_reduction <maximumf>, %24, %cst_11 [0] : vector<16x16xf32> to vector<16xf32>
    %26 = vector.shape_cast %25 : vector<16xf32> to vector<1x16xf32>
    %27 = vector.broadcast %26 : vector<1x16xf32> to vector<16x16xf32>
    %28 = arith.subf %24, %27 : vector<16x16xf32>
    %29 = math.exp %28 : vector<16x16xf32>
    %cst_12 = arith.constant dense<0.000000e+00> : vector<16xf32>
    %30 = vector.multi_reduction <add>, %29, %cst_12 [0] : vector<16x16xf32> to vector<16xf32>
    %31 = vector.shape_cast %30 : vector<16xf32> to vector<1x16xf32>
    %32 = tpu.reciprocal %31 {approx = true} : vector<1x16xf32> -> vector<1x16xf32>
    %33 = vector.broadcast %32 : vector<1x16xf32> to vector<16x16xf32>
    %34 = arith.mulf %29, %33 : vector<16x16xf32>
    %cst_13 = arith.constant dense<0.000000e+00> : vector<8x16xf32>
    %35 = tpu.matmul %23, %34, %cst_13 {dimension_numbers = #tpu.dot_dimension_numbers<[1], [0], [0], [1], [0, 0, 1, 1], [], []>} : vector<8x16xf32>, vector<16x16xf32>, vector<8x16xf32> -> vector<8x16xf32>
    %c8 = arith.constant 8 : index
    %c0_14 = arith.constant 0 : index
    %36 = vector.load %arg3[%c8, %c0_14] : memref<64x16xf32, #tpu.memory_space<vmem>>, vector<8x16xf32>
    tpu.vector_store %arg3[%c8, %c0_14], %35 {strides = array<i32>} : memref<64x16xf32, #tpu.memory_space<vmem>>, vector<8x16xf32>,
    %37 = vector.extract_strided_slice %4 {offsets = [16, 0], sizes = [8, 16], strides = [1, 1]} : vector<192x16xf32> to vector<8x16xf32>
    %38 = vector.extract_strided_slice %4 {offsets = [80, 0], sizes = [8, 16], strides = [1, 1]} : vector<192x16xf32> to vector<8x16xf32>
    %39 = vector.extract_strided_slice %4 {offsets = [144, 0], sizes = [8, 16], strides = [1, 1]} : vector<192x16xf32> to vector<8x16xf32>
    %cst_15 = arith.constant dense<0.000000e+00> : vector<16x16xf32>
    %40 = tpu.matmul %37, %38, %cst_15 {dimension_numbers = #tpu.dot_dimension_numbers<[0], [0], [1], [1], [0, 1, 1, 1], [], []>} : vector<8x16xf32>, vector<8x16xf32>, vector<16x16xf32> -> vector<16x16xf32>
    %cst_16 = arith.constant dense<0xFF800000> : vector<16xf32>
    %41 = vector.multi_reduction <maximumf>, %40, %cst_16 [0] : vector<16x16xf32> to vector<16xf32>
    %42 = vector.shape_cast %41 : vector<16xf32> to vector<1x16xf32>
    %43 = vector.broadcast %42 : vector<1x16xf32> to vector<16x16xf32>
    %44 = arith.subf %40, %43 : vector<16x16xf32>
    %45 = math.exp %44 : vector<16x16xf32>
    %cst_17 = arith.constant dense<0.000000e+00> : vector<16xf32>
    %46 = vector.multi_reduction <add>, %45, %cst_17 [0] : vector<16x16xf32> to vector<16xf32>
    %47 = vector.shape_cast %46 : vector<16xf32> to vector<1x16xf32>
    %48 = tpu.reciprocal %47 {approx = true} : vector<1x16xf32> -> vector<1x16xf32>
    %49 = vector.broadcast %48 : vector<1x16xf32> to vector<16x16xf32>
    %50 = arith.mulf %45, %49 : vector<16x16xf32>
    %cst_18 = arith.constant dense<0.000000e+00> : vector<8x16xf32>
    %51 = tpu.matmul %39, %50, %cst_18 {dimension_numbers = #tpu.dot_dimension_numbers<[1], [0], [0], [1], [0, 0, 1, 1], [], []>} : vector<8x16xf32>, vector<16x16xf32>, vector<8x16xf32> -> vector<8x16xf32>
    %c16 = arith.constant 16 : index
    %c0_19 = arith.constant 0 : index
    %52 = vector.load %arg3[%c16, %c0_19] : memref<64x16xf32, #tpu.memory_space<vmem>>, vector<8x16xf32>
    tpu.vector_store %arg3[%c16, %c0_19], %51 {strides = array<i32>} : memref<64x16xf32, #tpu.memory_space<vmem>>, vector<8x16xf32>,
    %53 = vector.extract_strided_slice %4 {offsets = [24, 0], sizes = [8, 16], strides = [1, 1]} : vector<192x16xf32> to vector<8x16xf32>
    %54 = vector.extract_strided_slice %4 {offsets = [88, 0], sizes = [8, 16], strides = [1, 1]} : vector<192x16xf32> to vector<8x16xf32>
    %55 = vector.extract_strided_slice %4 {offsets = [152, 0], sizes = [8, 16], strides = [1, 1]} : vector<192x16xf32> to vector<8x16xf32>
    %cst_20 = arith.constant dense<0.000000e+00> : vector<16x16xf32>
    %56 = tpu.matmul %53, %54, %cst_20 {dimension_numbers = #tpu.dot_dimension_numbers<[0], [0], [1], [1], [0, 1, 1, 1], [], []>} : vector<8x16xf32>, vector<8x16xf32>, vector<16x16xf32> -> vector<16x16xf32>
    %cst_21 = arith.constant dense<0xFF800000> : vector<16xf32>
    %57 = vector.multi_reduction <maximumf>, %56, %cst_21 [0] : vector<16x16xf32> to vector<16xf32>
    %58 = vector.shape_cast %57 : vector<16xf32> to vector<1x16xf32>
    %59 = vector.broadcast %58 : vector<1x16xf32> to vector<16x16xf32>
    %60 = arith.subf %56, %59 : vector<16x16xf32>
    %61 = math.exp %60 : vector<16x16xf32>
    %cst_22 = arith.constant dense<0.000000e+00> : vector<16xf32>
    %62 = vector.multi_reduction <add>, %61, %cst_22 [0] : vector<16x16xf32> to vector<16xf32>
    %63 = vector.shape_cast %62 : vector<16xf32> to vector<1x16xf32>
    %64 = tpu.reciprocal %63 {approx = true} : vector<1x16xf32> -> vector<1x16xf32>
    %65 = vector.broadcast %64 : vector<1x16xf32> to vector<16x16xf32>
    %66 = arith.mulf %61, %65 : vector<16x16xf32>
    %cst_23 = arith.constant dense<0.000000e+00> : vector<8x16xf32>
    %67 = tpu.matmul %55, %66, %cst_23 {dimension_numbers = #tpu.dot_dimension_numbers<[1], [0], [0], [1], [0, 0, 1, 1], [], []>} : vector<8x16xf32>, vector<16x16xf32>, vector<8x16xf32> -> vector<8x16xf32>
    %c24 = arith.constant 24 : index
    %c0_24 = arith.constant 0 : index
    %68 = vector.load %arg3[%c24, %c0_24] : memref<64x16xf32, #tpu.memory_space<vmem>>, vector<8x16xf32>
    tpu.vector_store %arg3[%c24, %c0_24], %67 {strides = array<i32>} : memref<64x16xf32, #tpu.memory_space<vmem>>, vector<8x16xf32>,
    %69 = vector.extract_strided_slice %4 {offsets = [32, 0], sizes = [8, 16], strides = [1, 1]} : vector<192x16xf32> to vector<8x16xf32>
    %70 = vector.extract_strided_slice %4 {offsets = [96, 0], sizes = [8, 16], strides = [1, 1]} : vector<192x16xf32> to vector<8x16xf32>
    %71 = vector.extract_strided_slice %4 {offsets = [160, 0], sizes = [8, 16], strides = [1, 1]} : vector<192x16xf32> to vector<8x16xf32>
    %cst_25 = arith.constant dense<0.000000e+00> : vector<16x16xf32>
    %72 = tpu.matmul %69, %70, %cst_25 {dimension_numbers = #tpu.dot_dimension_numbers<[0], [0], [1], [1], [0, 1, 1, 1], [], []>} : vector<8x16xf32>, vector<8x16xf32>, vector<16x16xf32> -> vector<16x16xf32>
    %cst_26 = arith.constant dense<0xFF800000> : vector<16xf32>
    %73 = vector.multi_reduction <maximumf>, %72, %cst_26 [0] : vector<16x16xf32> to vector<16xf32>
    %74 = vector.shape_cast %73 : vector<16xf32> to vector<1x16xf32>
    %75 = vector.broadcast %74 : vector<1x16xf32> to vector<16x16xf32>
    %76 = arith.subf %72, %75 : vector<16x16xf32>
    %77 = math.exp %76 : vector<16x16xf32>
    %cst_27 = arith.constant dense<0.000000e+00> : vector<16xf32>
    %78 = vector.multi_reduction <add>, %77, %cst_27 [0] : vector<16x16xf32> to vector<16xf32>
    %79 = vector.shape_cast %78 : vector<16xf32> to vector<1x16xf32>
    %80 = tpu.reciprocal %79 {approx = true} : vector<1x16xf32> -> vector<1x16xf32>
    %81 = vector.broadcast %80 : vector<1x16xf32> to vector<16x16xf32>
    %82 = arith.mulf %77, %81 : vector<16x16xf32>
    %cst_28 = arith.constant dense<0.000000e+00> : vector<8x16xf32>
    %83 = tpu.matmul %71, %82, %cst_28 {dimension_numbers = #tpu.dot_dimension_numbers<[1], [0], [0], [1], [0, 0, 1, 1], [], []>} : vector<8x16xf32>, vector<16x16xf32>, vector<8x16xf32> -> vector<8x16xf32>
    %c32 = arith.constant 32 : index
    %c0_29 = arith.constant 0 : index
    %84 = vector.load %arg3[%c32, %c0_29] : memref<64x16xf32, #tpu.memory_space<vmem>>, vector<8x16xf32>
    tpu.vector_store %arg3[%c32, %c0_29], %83 {strides = array<i32>} : memref<64x16xf32, #tpu.memory_space<vmem>>, vector<8x16xf32>,
    %85 = vector.extract_strided_slice %4 {offsets = [40, 0], sizes = [8, 16], strides = [1, 1]} : vector<192x16xf32> to vector<8x16xf32>
    %86 = vector.extract_strided_slice %4 {offsets = [104, 0], sizes = [8, 16], strides = [1, 1]} : vector<192x16xf32> to vector<8x16xf32>
    %87 = vector.extract_strided_slice %4 {offsets = [168, 0], sizes = [8, 16], strides = [1, 1]} : vector<192x16xf32> to vector<8x16xf32>
    %cst_30 = arith.constant dense<0.000000e+00> : vector<16x16xf32>
    %88 = tpu.matmul %85, %86, %cst_30 {dimension_numbers = #tpu.dot_dimension_numbers<[0], [0], [1], [1], [0, 1, 1, 1], [], []>} : vector<8x16xf32>, vector<8x16xf32>, vector<16x16xf32> -> vector<16x16xf32>
    %cst_31 = arith.constant dense<0xFF800000> : vector<16xf32>
    %89 = vector.multi_reduction <maximumf>, %88, %cst_31 [0] : vector<16x16xf32> to vector<16xf32>
    %90 = vector.shape_cast %89 : vector<16xf32> to vector<1x16xf32>
    %91 = vector.broadcast %90 : vector<1x16xf32> to vector<16x16xf32>
    %92 = arith.subf %88, %91 : vector<16x16xf32>
    %93 = math.exp %92 : vector<16x16xf32>
    %cst_32 = arith.constant dense<0.000000e+00> : vector<16xf32>
    %94 = vector.multi_reduction <add>, %93, %cst_32 [0] : vector<16x16xf32> to vector<16xf32>
    %95 = vector.shape_cast %94 : vector<16xf32> to vector<1x16xf32>
    %96 = tpu.reciprocal %95 {approx = true} : vector<1x16xf32> -> vector<1x16xf32>
    %97 = vector.broadcast %96 : vector<1x16xf32> to vector<16x16xf32>
    %98 = arith.mulf %93, %97 : vector<16x16xf32>
    %cst_33 = arith.constant dense<0.000000e+00> : vector<8x16xf32>
    %99 = tpu.matmul %87, %98, %cst_33 {dimension_numbers = #tpu.dot_dimension_numbers<[1], [0], [0], [1], [0, 0, 1, 1], [], []>} : vector<8x16xf32>, vector<16x16xf32>, vector<8x16xf32> -> vector<8x16xf32>
    %c40 = arith.constant 40 : index
    %c0_34 = arith.constant 0 : index
    %100 = vector.load %arg3[%c40, %c0_34] : memref<64x16xf32, #tpu.memory_space<vmem>>, vector<8x16xf32>
    tpu.vector_store %arg3[%c40, %c0_34], %99 {strides = array<i32>} : memref<64x16xf32, #tpu.memory_space<vmem>>, vector<8x16xf32>,
    %101 = vector.extract_strided_slice %4 {offsets = [48, 0], sizes = [8, 16], strides = [1, 1]} : vector<192x16xf32> to vector<8x16xf32>
    %102 = vector.extract_strided_slice %4 {offsets = [112, 0], sizes = [8, 16], strides = [1, 1]} : vector<192x16xf32> to vector<8x16xf32>
    %103 = vector.extract_strided_slice %4 {offsets = [176, 0], sizes = [8, 16], strides = [1, 1]} : vector<192x16xf32> to vector<8x16xf32>
    %cst_35 = arith.constant dense<0.000000e+00> : vector<16x16xf32>
    %104 = tpu.matmul %101, %102, %cst_35 {dimension_numbers = #tpu.dot_dimension_numbers<[0], [0], [1], [1], [0, 1, 1, 1], [], []>} : vector<8x16xf32>, vector<8x16xf32>, vector<16x16xf32> -> vector<16x16xf32>
    %cst_36 = arith.constant dense<0xFF800000> : vector<16xf32>
    %105 = vector.multi_reduction <maximumf>, %104, %cst_36 [0] : vector<16x16xf32> to vector<16xf32>
    %106 = vector.shape_cast %105 : vector<16xf32> to vector<1x16xf32>
    %107 = vector.broadcast %106 : vector<1x16xf32> to vector<16x16xf32>
    %108 = arith.subf %104, %107 : vector<16x16xf32>
    %109 = math.exp %108 : vector<16x16xf32>
    %cst_37 = arith.constant dense<0.000000e+00> : vector<16xf32>
    %110 = vector.multi_reduction <add>, %109, %cst_37 [0] : vector<16x16xf32> to vector<16xf32>
    %111 = vector.shape_cast %110 : vector<16xf32> to vector<1x16xf32>
    %112 = tpu.reciprocal %111 {approx = true} : vector<1x16xf32> -> vector<1x16xf32>
    %113 = vector.broadcast %112 : vector<1x16xf32> to vector<16x16xf32>
    %114 = arith.mulf %109, %113 : vector<16x16xf32>
    %cst_38 = arith.constant dense<0.000000e+00> : vector<8x16xf32>
    %115 = tpu.matmul %103, %114, %cst_38 {dimension_numbers = #tpu.dot_dimension_numbers<[1], [0], [0], [1], [0, 0, 1, 1], [], []>} : vector<8x16xf32>, vector<16x16xf32>, vector<8x16xf32> -> vector<8x16xf32>
    %c48 = arith.constant 48 : index
    %c0_39 = arith.constant 0 : index
    %116 = vector.load %arg3[%c48, %c0_39] : memref<64x16xf32, #tpu.memory_space<vmem>>, vector<8x16xf32>
    tpu.vector_store %arg3[%c48, %c0_39], %115 {strides = array<i32>} : memref<64x16xf32, #tpu.memory_space<vmem>>, vector<8x16xf32>,
    %117 = vector.extract_strided_slice %4 {offsets = [56, 0], sizes = [8, 16], strides = [1, 1]} : vector<192x16xf32> to vector<8x16xf32>
    %118 = vector.extract_strided_slice %4 {offsets = [120, 0], sizes = [8, 16], strides = [1, 1]} : vector<192x16xf32> to vector<8x16xf32>
    %119 = vector.extract_strided_slice %4 {offsets = [184, 0], sizes = [8, 16], strides = [1, 1]} : vector<192x16xf32> to vector<8x16xf32>
    %cst_40 = arith.constant dense<0.000000e+00> : vector<16x16xf32>
    %120 = tpu.matmul %117, %118, %cst_40 {dimension_numbers = #tpu.dot_dimension_numbers<[0], [0], [1], [1], [0, 1, 1, 1], [], []>} : vector<8x16xf32>, vector<8x16xf32>, vector<16x16xf32> -> vector<16x16xf32>
    %cst_41 = arith.constant dense<0xFF800000> : vector<16xf32>
    %121 = vector.multi_reduction <maximumf>, %120, %cst_41 [0] : vector<16x16xf32> to vector<16xf32>
    %122 = vector.shape_cast %121 : vector<16xf32> to vector<1x16xf32>
    %123 = vector.broadcast %122 : vector<1x16xf32> to vector<16x16xf32>
    %124 = arith.subf %120, %123 : vector<16x16xf32>
    %125 = math.exp %124 : vector<16x16xf32>
    %cst_42 = arith.constant dense<0.000000e+00> : vector<16xf32>
    %126 = vector.multi_reduction <add>, %125, %cst_42 [0] : vector<16x16xf32> to vector<16xf32>
    %127 = vector.shape_cast %126 : vector<16xf32> to vector<1x16xf32>
    %128 = tpu.reciprocal %127 {approx = true} : vector<1x16xf32> -> vector<1x16xf32>
    %129 = vector.broadcast %128 : vector<1x16xf32> to vector<16x16xf32>
    %130 = arith.mulf %125, %129 : vector<16x16xf32>
    %cst_43 = arith.constant dense<0.000000e+00> : vector<8x16xf32>
    %131 = tpu.matmul %119, %130, %cst_43 {dimension_numbers = #tpu.dot_dimension_numbers<[1], [0], [0], [1], [0, 0, 1, 1], [], []>} : vector<8x16xf32>, vector<16x16xf32>, vector<8x16xf32> -> vector<8x16xf32>
    %c56 = arith.constant 56 : index
    %c0_44 = arith.constant 0 : index
    %132 = vector.load %arg3[%c56, %c0_44] : memref<64x16xf32, #tpu.memory_space<vmem>>, vector<8x16xf32>
    tpu.vector_store %arg3[%c56, %c0_44], %131 {strides = array<i32>} : memref<64x16xf32, #tpu.memory_space<vmem>>, vector<8x16xf32>,
    %c0_45 = arith.constant 0 : index
    %c0_46 = arith.constant 0 : index
    %133 = vector.load %arg3[%c0_45, %c0_46] : memref<64x16xf32, #tpu.memory_space<vmem>>, vector<64x16xf32>
    %134 = arith.truncf %133 : vector<64x16xf32> to vector<64x16xbf16>
    %cst_47 = arith.constant dense<0.000000e+00> : vector<64x16xf32>
    %135 = tpu.matmul %3, %134, %cst_47 {dimension_numbers = #tpu.dot_dimension_numbers<[1], [0], [0], [1], [0, 0, 1, 1], [], []>} : vector<64x64xbf16>, vector<64x16xbf16>, vector<64x16xf32> -> vector<64x16xf32>
    %c0_48 = arith.constant 0 : index
    %c0_49 = arith.constant 0 : index
    %136 = vector.load %arg2[%c0_48, %c0_49] : memref<64x16xf32, #tpu.memory_space<vmem>>, vector<64x16xf32>
    tpu.vector_store %arg2[%c0_48, %c0_49], %135 {strides = array<i32>} : memref<64x16xf32, #tpu.memory_space<vmem>>, vector<64x16xf32>,
    return
  }
}

</mosaic_0001>

<bundles_post_ra>
// kernel: self_attention.1
= control target key start
LH: loop header
LB: loop body
LE: loop exit
PB: predicated region body
PF: predicated region fallthrough
CT: control target
= control target key end

     0   :  { %vm116_vm0 = vcmask 523264   ;;  %vm254_vm1 = vcmask 64512   ;;  %vm284_vm2 = vcmask 130048   ;;  %s1628_s0 = inlined_call_operand.vmem [shape: f32[64,16], index: 0, kind: input, shape index: {}]   ;;  %s1629_s1 = inlined_call_operand.vmem [shape: bf16[256,64], index: 1, kind: input, shape index: {}]   ;;  %s1630_s2 = inlined_call_operand.vmem [shape: f32[64,16], index: 2, kind: output, shape index: {}]  }
   0x1   :  { %v18_v0 = vld [vmem:[%s1628_s0 + $0x30] sm:$0xff]  ;;  %v19_v1 = vld [vmem:[%s1628_s0 + $0x38] sm:$0xff]  ;;  %v16_v2 = vld [vmem:[%s1628_s0 + $0x20] sm:$0xff] }
   0x2   :  { %v23_v3 = vpack.c.bf16 %v19_v1, %v18_v0  ;;  %v17_v4 = vld [vmem:[%s1628_s0 + $0x28] sm:$0xff]  ;;  %v14_v6 = vld [vmem:[%s1628_s0 + $0x10] sm:$0xff]  ;;  %v15_v7 = vld [vmem:[%s1628_s0 + $0x18] sm:$0xff] }
   0x3   :  { %v22_v5 = vpack.c.bf16 %v17_v4, %v16_v2  ;;  %v21_v8 = vpack.c.bf16 %v15_v7, %v14_v6  ;;  %v12_v9 = vld [vmem:[%s1628_s0] sm:$0xff]  ;;  %v13_v10 = vld [vmem:[%s1628_s0 + $0x8] sm:$0xff]  ;;  %v1311_v14 = vld [vmem:[%s1629_s1 + $0x10] sm:$0xff] }
   0x4   :  { %157 = vmatpush.bf16.msra.mxu0 %v23_v3  ;;  %1326 = vmatpush.bf16.msra.mxu3 %v23_v3  ;;  %v20_v11 = vpack.c.bf16 %v13_v10, %v12_v9  ;;  %v1309_v12 = vld [vmem:[%s1629_s1] sm:$0xff]  ;;  %v1310_v13 = vld [vmem:[%s1629_s1 + $0x8] sm:$0xff]  ;;  %v1312_v15 = vld [vmem:[%s1629_s1 + $0x18] sm:$0xff] }
   0x5   :  { %1325 = vmatpush.bf16.msra.mxu2 %v23_v3  ;;  %v1313_v16 = vld [vmem:[%s1629_s1 + $0x20] sm:$0xff]  ;;  %v1314_v17 = vld [vmem:[%s1629_s1 + $0x28] sm:$0xff]  ;;  %v1316_v25 = vld [vmem:[%s1629_s1 + $0x38] sm:$0xff] }
   0x6   :  { %v1318_v23 = vld [vmem:[%s1629_s1 + $0x48] sm:$0xff]  ;;  %v1315_v26 = vld [vmem:[%s1629_s1 + $0x30] sm:$0xff]  ;;  %v1317_v29 = vld [vmem:[%s1629_s1 + $0x40] sm:$0xff] }
   0x7   :  { %v1319_v27 = vld [vmem:[%s1629_s1 + $0x50] sm:$0xff]  ;;  %v1320_v31 = vld [vmem:[%s1629_s1 + $0x58] sm:$0xff] }
   0x8   :  { %158 = vmatpush.bf16.msra.mxu0 %v22_v5  ;;  %1328 = vmatpush.bf16.msra.mxu3 %v22_v5 }
   0x9   :  { %1327 = vmatpush.bf16.msra.mxu2 %v22_v5 }
   0xc   :  { %159 = vmatpush.bf16.msra.mxu0 %v21_v8  ;;  %1330 = vmatpush.bf16.msra.mxu3 %v21_v8 }
   0xd   :  { %1329 = vmatpush.bf16.msra.mxu2 %v21_v8 }
  0x10   :  { %160 = vmatpush.bf16.msra.mxu0 %v20_v11  ;;  %1332 = vmatpush.bf16.msra.mxu3 %v20_v11 }
  0x11   :  { %1331 = vmatpush.bf16.msra.mxu2 %v20_v11 }
  0x13   :  { %1253 = vmatmul.msk.bf16.vlgmr.msra.gmra.mxu0 %vm116_vm0, %v1309_v12  ;;  %1262 = vmatmul.msk.bf16.vlgmr.msra.gmra.mxu3 %vm116_vm0, %v1318_v23 }
  0x14   :  { %1260 = vmatmul.msk.bf16.vlgmr.msra.gmra.mxu2 %vm116_vm0, %v1316_v25 }
  0x23   :  { %1254 = vmatmul.msk.bf16.gmra.mxu0 %vm116_vm0, %v1310_v13  ;;  %1263 = vmatmul.msk.bf16.gmra.mxu3 %vm116_vm0, %v1319_v27 }
  0x24   :  { %1261 = vmatmul.msk.bf16.gmra.mxu2 %vm116_vm0, %v1317_v29 }
  0x33   :  { %1255 = vmatmul.msk.bf16.gmra.mxu0 %vm116_vm0, %v1311_v14  ;;  %1264 = vmatmul.msk.bf16.gmra.mxu3 %vm116_vm0, %v1320_v31 }
  0x43   :  { %1256 = vmatmul.msk.bf16.gmra.mxu0 %vm116_vm0, %v1312_v15 }
  0x53   :  { %1257 = vmatmul.msk.bf16.gmra.mxu0 %vm116_vm0, %v1313_v16 }
  0x63   :  { %1258 = vmatmul.msk.bf16.gmra.mxu0 %vm116_vm0, %v1314_v17 }
  0x73   :  { %1259 = vmatmul.msk.bf16.gmra.mxu0 %vm116_vm0, %v1315_v26 }
  0x90   :  { %v162_v18 = vpop.f32.mrf.mxu0 }
  0x91   :  { %222 = vxpose.xlu0.b32.start.end [1/1] (short) (narrow) %v162_v18, 16 }
  0x96   :  { %v1478_v44 = vpop.f32.mrf.mxu3 }
  0x97   :  { %v197_v41 = vpop.f32.mrf.mxu2 }
  0x98   :  { %v164_v19 = vpop.f32.mrf.mxu0 }
  0x9e   :  { %v1480_v45 = vpop.f32.mrf.mxu3 }
  0x9f   :  { %v1484_v47 = vpop.f32.mrf.mxu2 }
  0xa0   :  { %v167_v20 = vpop.f32.mrf.mxu0 }
  0xa1   :  { %336 = vxpose.xlu0.b32.start.end [1/1] (short) (narrow) %v164_v19, 16  ;;  %448 = vxpose.xlu1.b32.start.end [1/1] (short) (narrow) %v167_v20, 16 }
  0xa6   :  { %v1482_v46 = vpop.f32.mrf.mxu3 }
  0xa7   :  { %v1488_v49 = vpop.f32.mrf.mxu2 }
  0xa8   :  { %v169_v21 = vpop.f32.mrf.mxu0 }
  0xae   :  { %v1486_v48 = vpop.f32.mrf.mxu3 }
  0xaf   :  { %v1492_v51 = vpop.f32.mrf.mxu2 }
  0xb0   :  { %v172_v22 = vpop.f32.mrf.mxu0 }
  0xb1   :  { %560 = vxpose.xlu1.b32.start.end [1/1] (short) (narrow) %v169_v21, 16  ;;  %672 = vxpose.xlu2.b32.start.end [1/1] (short) (narrow) %v172_v22, 16 }
  0xb6   :  { %v1490_v50 = vpop.f32.mrf.mxu3 }
  0xb8   :  { %v174_v24 = vpop.f32.mrf.mxu0 }
  0xbe   :  { %v1494_v53 = vpop.f32.mrf.mxu3 }
  0xc0   :  { %v177_v28 = vpop.f32.mrf.mxu0 }
  0xc1   :  { %784 = vxpose.xlu2.b32.start.end [1/1] (short) (narrow) %v174_v24, 16  ;;  %896 = vxpose.xlu0.b32.start.end [1/1] (short) (narrow) %v177_v28, 16 }
  0xc8   :  { %v179_v30 = vpop.f32.mrf.mxu0 }
  0xc9   :  { %1008 = vxpose.xlu1.b32.start.end [1/1] (short) (narrow) %v179_v30, 16 }
  0xd0   :  { %v182_v32 = vpop.f32.mrf.mxu0 }
  0xd1   :  { %276 = vmatpush.msra.mxu1 %v182_v32  ;;  %1333 = vmatpush.msrb.mxu2 %v182_v32 }
  0xd8   :  { %v184_v33 = vpop.f32.mrf.mxu0 }
  0xd9   :  { %389 = vmatpush.msrb.mxu3 %v184_v33 }
  0xe0   :  { %v187_v34 = vpop.f32.mrf.mxu0 }
  0xe1   :  { %501 = vmatpush.msrb.mxu1 %v187_v34 }
  0xe8   :  { %v1470_v35 = vpop.f32.mrf.mxu0 }
  0xf0   :  { %v192_v37 = vpop.f32.mrf.mxu0 }
 0x135   :  { %v238_v36 = vpop.trf.xlu0 }
 0x136   :  { %1265 = vmatmul.msk.f32.vlgmr.msra.gmra.mxu1 %vm254_vm1, %v238_v36 }
 0x137   :  { %725 = vmatpush.msra.mxu1 %v192_v37 }
 0x13d   :  { %v239_v38 = vpop.trf.xlu0 }
 0x13e   :  { %1266 = vmatmul.msk.f32.vlgmr.msrb.gmra.mxu2 %vm254_vm1, %v239_v38 }
 0x145   :  { %v352_v39 = vpop.trf.xlu0  ;;  %v464_v40 = vpop.trf.xlu1 }
 0x146   :  { %1268 = vmatmul.msk.f32.vlgmr.msrb.gmra.mxu3 %vm254_vm1, %v352_v39  ;;  %1271 = vmatmul.msk.f32.vlgmr.msrb.gmra.mxu1 %vm254_vm1, %v464_v40 }
 0x147   :  { %949 = vmatpush.msrb.mxu1 %v197_v41 }
 0x14a   :  { %v688_v57 = vpop.trf.xlu2 }
 0x14d   :  { %v353_v42 = vpop.trf.xlu0  ;;  %v465_v43 = vpop.trf.xlu1 }
 0x14e   :  { %1269 = vmatmul.msk.f32.gmra.mxu3 %vm254_vm1, %v353_v42  ;;  %1272 = vmatmul.msk.f32.gmra.mxu1 %vm254_vm1, %v465_v43 }
 0x152   :  { %v689_v1 = vpop.trf.xlu2 }
 0x156   :  { %1277 = vmatmul.msk.f32.vlgmr.msra.gmra.mxu1 %vm254_vm1, %v688_v57 }
 0x15e   :  { %1278 = vmatmul.msk.f32.gmra.mxu1 %vm254_vm1, %v689_v1 }
 0x165   :  { %v912_v38 = vpop.trf.xlu0 }
 0x166   :  { %1283 = vmatmul.msk.f32.vlgmr.msrb.gmra.mxu1 %vm254_vm1, %v912_v38 }
 0x1b3   :  { %v278_v52 = vpop.f32.mrf.mxu1 }
 0x1b4   :  { %v285_v55 = vsel %vm284_vm2, %v278_v52, -inf }
 0x1c1   :  { %v281_v54 = vpop.f32.mrf.mxu2 }
 0x1c2   :  { %v286_v56 = vsel %vm284_vm2, %v281_v54, -inf }
 0x1c3   :  { %v287_v58 = vmax.f32 %v285_v55, %v286_v56  ;;  %v503_v59 = vpop.f32.mrf.mxu1 }
 0x1c4   :  { %v509_v0 = vsel %vm284_vm2, %v503_v59, -inf }
 0x1c5   :  { %v288_v60 = vrot.slane %v287_v58, 4 }
 0x1c7   :  { %v289_v61 = vmax.f32 %v287_v58, %v288_v60  ;;  %v913_v60 = vpop.trf.xlu0 }
 0x1c8   :  { %1284 = vmatmul.msk.f32.gmra.mxu1 %vm254_vm1, %v913_v60 }
 0x1c9   :  { %v290_v62 = vrot.slane %v289_v61, 2  ;;  %v391_v63 = vpop.f32.mrf.mxu3 }
 0x1ca   :  { %v397_v13 = vsel %vm284_vm2, %v391_v63, -inf }
 0x1cb   :  { %v291_v2 = vmax.f32 %v289_v61, %v290_v62  ;;  %v506_v3 = vpop.f32.mrf.mxu1 }
 0x1cc   :  { %v510_v4 = vsel %vm284_vm2, %v506_v3, -inf }
 0x1cd   :  { %v292_v5 = vrot.slane %v291_v2, 1  ;;  %v511_v6 = vmax.f32 %v509_v0, %v510_v4 }
 0x1cf   :  { %v293_v7 = vmax.f32 %v291_v2, %v292_v5  ;;  %v512_v8 = vrot.slane %v511_v6, 4 }
 0x1d1   :  { %v294_v9 = vsub.f32 %v278_v52, %v293_v7  ;;  %v295_v10 = vsub.f32 %v281_v54, %v293_v7  ;;  %v513_v11 = vmax.f32 %v511_v6, %v512_v8  ;;  %v394_v12 = vpop.f32.mrf.mxu3 }
 0x1d2   :  { %v398_v14 = vsel %vm284_vm2, %v394_v12, -inf }
 0x1d3   :  { %v296_v15 = vmul.f32 1.442695, %v294_v9  ;;  %v298_v16 = vmul.f32 1.442695, %v295_v10  ;;  %v514_v17 = vrot.slane %v513_v11, 2  ;;  %v399_v18 = vmax.f32 %v397_v13, %v398_v14 }
 0x1d5   :  { %1335 = vpow2.f32 %v296_v15  ;;  %v515_v19 = vmax.f32 %v513_v11, %v514_v17  ;;  %v400_v20 = vrot.slane %v399_v18, 4 }
 0x1d6   :  { %1337 = vpow2.f32 %v298_v16 }
 0x1d7   :  { %v516_v21 = vrot.slane %v515_v19, 1  ;;  %v401_v22 = vmax.f32 %v399_v18, %v400_v20 }
 0x1d9   :  { %v517_v23 = vmax.f32 %v515_v19, %v516_v21  ;;  %v402_v24 = vrot.slane %v401_v22, 2 }
 0x1db   :  { %v1336_v25 = vpop.eup %1335  ;;  %v518_v26 = vsub.f32 %v503_v59, %v517_v23  ;;  %v519_v27 = vsub.f32 %v506_v3, %v517_v23  ;;  %v403_v28 = vmax.f32 %v401_v22, %v402_v24 }
 0x1dc   :  { %v1338_v29 = vpop.eup %1337  ;;  %v300_v30 = vsel %vm284_vm2, %v1336_v25, 0.0 }
 0x1dd   :  { %v301_v31 = vsel %vm284_vm2, %v1338_v29, 0.0  ;;  %v520_v32 = vmul.f32 1.442695, %v518_v26  ;;  %v522_v33 = vmul.f32 1.442695, %v519_v27  ;;  %v404_v34 = vrot.slane %v403_v28, 1  ;;  %v194_v26 = vpop.f32.mrf.mxu0 }
 0x1de   :  { %v302_v36 = vadd.f32 %v301_v31, %v300_v30 }
 0x1df   :  { %1339 = vpow2.f32 %v520_v32  ;;  %v405_v37 = vmax.f32 %v403_v28, %v404_v34 }
 0x1e0   :  { %v303_v39 = vrot.slane %v302_v36, 4  ;;  %1341 = vpow2.f32 %v522_v33 }
 0x1e1   :  { %v406_v40 = vsub.f32 %v391_v63, %v405_v37  ;;  %v407_v41 = vsub.f32 %v394_v12, %v405_v37 }
 0x1e2   :  { %v304_v42 = vadd.f32 %v303_v39, %v302_v36 }
 0x1e3   :  { %v408_v43 = vmul.f32 1.442695, %v406_v40  ;;  %v410_v52 = vmul.f32 1.442695, %v407_v41 }
 0x1e4   :  { %v305_v54 = vrot.slane %v304_v42, 2 }
 0x1e5   :  { %v1340_v55 = vpop.eup %1339  ;;  %1343 = vpow2.f32 %v408_v43 }
 0x1e6   :  { %v1342_v56 = vpop.eup %1341  ;;  %v306_v57 = vadd.f32 %v305_v54, %v304_v42  ;;  %v524_v58 = vsel %vm284_vm2, %v1340_v55, 0.0  ;;  %1345 = vpow2.f32 %v410_v52 }
 0x1e7   :  { %v525_v59 = vsel %vm284_vm2, %v1342_v56, 0.0 }
 0x1e8   :  { %v307_v61 = vrot.slane %v306_v57, 1  ;;  %v526_v62 = vadd.f32 %v525_v59, %v524_v58 }
 0x1ea   :  { %v527_v63 = vrot.slane %v526_v62, 4  ;;  %v308_v0 = vadd.f32 %v307_v61, %v306_v57 }
 0x1eb   :  { %v1344_v1 = vpop.eup %1343 }
 0x1ec   :  { %v1346_v2 = vpop.eup %1345  ;;  %v528_v3 = vadd.f32 %v527_v63, %v526_v62  ;;  %v412_v4 = vsel %vm284_vm2, %v1344_v1, 0.0  ;;  %1347 = vrcp.f32 %v308_v0 }
 0x1ed   :  { %v413_v5 = vsel %vm284_vm2, %v1346_v2, 0.0 }
 0x1ee   :  { %v529_v6 = vrot.slane %v528_v3, 2  ;;  %v414_v7 = vadd.f32 %v413_v5, %v412_v4 }
 0x1f0   :  { %v530_v8 = vadd.f32 %v529_v6, %v528_v3  ;;  %v415_v9 = vrot.slane %v414_v7, 4 }
 0x1f2   :  { %v1348_v10 = vpop.eup %1347  ;;  %v531_v11 = vrot.slane %v530_v8, 1  ;;  %v416_v12 = vadd.f32 %v415_v9, %v414_v7 }
 0x1f3   :  { %v311_v13 = vmul.f32 %v1348_v10, %v1338_v29  ;;  %v310_v16 = vmul.f32 %v1348_v10, %v1336_v25 }
 0x1f4   :  { %v417_v14 = vrot.slane %v416_v12, 2  ;;  %v532_v15 = vadd.f32 %v531_v11, %v530_v8 }
 0x1f5   :  { %329 = vmatpush.msra.mxu2 %v311_v13 }
 0x1f6   :  { %v418_v17 = vadd.f32 %v417_v14, %v416_v12  ;;  %1349 = vrcp.f32 %v532_v15 }
 0x1f7   :  { %330 = vmatpush.msra.mxu2 %v310_v16 }
 0x1f8   :  { %v419_v18 = vrot.slane %v418_v17, 1  ;;  %1267 = vmatmul.msk.f32.vlgmr.msra.gmra.mxu2 %vm284_vm2, %v1488_v49  ;;  %v576_v49 = vpop.trf.xlu1 }
 0x1fa   :  { %v420_v19 = vadd.f32 %v419_v18, %v418_v17 }
 0x1fc   :  { %v1350_v20 = vpop.eup %1349  ;;  %1351 = vrcp.f32 %v420_v19 }
 0x1fd   :  { %v535_v21 = vmul.f32 %v1350_v20, %v1342_v56  ;;  %v534_v22 = vmul.f32 %v1350_v20, %v1340_v55 }
 0x1ff   :  { %553 = vmatpush.msra.mxu3 %v535_v21 }
 0x200   :  { %v577_v27 = vpop.trf.xlu1 }
 0x201   :  { %554 = vmatpush.msra.mxu3 %v534_v22 }
 0x202   :  { %v1352_v23 = vpop.eup %1351  ;;  %1273 = vmatmul.msk.f32.vlgmr.msra.gmra.mxu3 %vm284_vm2, %v1478_v44  ;;  %v800_v44 = vpop.trf.xlu2 }
 0x203   :  { %v423_v24 = vmul.f32 %v1352_v23, %v1346_v2  ;;  %v422_v25 = vmul.f32 %v1352_v23, %v1344_v1 }
 0x205   :  { %441 = vmatpush.msrb.mxu2 %v423_v24 }
 0x207   :  { %442 = vmatpush.msrb.mxu2 %v422_v25 }
 0x208   :  { %1270 = vmatmul.msk.f32.vlgmr.msrb.gmra.mxu2 %vm284_vm2, %v1492_v51  ;;  %v1024_v29 = vpop.trf.xlu1 }
 0x209   :  { %613 = vmatpush.msra.mxu2 %v1470_v35  ;;  %v727_v35 = vpop.f32.mrf.mxu1 }
 0x20a   :  { %v801_v28 = vpop.trf.xlu2  ;;  %v733_v31 = vsel %vm284_vm2, %v727_v35, -inf }
 0x20b   :  { %837 = vmatpush.msrb.mxu2 %v194_v26 }
 0x210   :  { %1274 = vmatmul.msk.f32.vlgmr.msra.gmra.mxu2 %vm254_vm1, %v576_v49  ;;  %v1025_v51 = vpop.trf.xlu1 }
 0x211   :  { %1061 = vmatpush.msra.mxu2 %v1484_v47  ;;  %v730_v30 = vpop.f32.mrf.mxu1 }
 0x212   :  { %v734_v47 = vsel %vm284_vm2, %v730_v30, -inf }
 0x213   :  { %v735_v33 = vmax.f32 %v733_v31, %v734_v47 }
 0x215   :  { %v736_v36 = vrot.slane %v735_v33, 4 }
 0x217   :  { %v737_v37 = vmax.f32 %v735_v33, %v736_v36 }
 0x218   :  { %1275 = vmatmul.msk.f32.gmra.mxu2 %vm254_vm1, %v577_v27 }
 0x219   :  { %v951_v34 = vpop.f32.mrf.mxu1  ;;  %v738_v40 = vrot.slane %v737_v37, 2 }
 0x21a   :  { %v957_v41 = vsel %vm284_vm2, %v951_v34, -inf }
 0x21b   :  { %v739_v52 = vmax.f32 %v737_v37, %v738_v40 }
 0x21d   :  { %v740_v55 = vrot.slane %v739_v52, 1 }
 0x21f   :  { %v741_v58 = vmax.f32 %v739_v52, %v740_v55 }
 0x220   :  { %1280 = vmatmul.msk.f32.vlgmr.msrb.gmra.mxu2 %vm254_vm1, %v800_v44 }
 0x221   :  { %v742_v60 = vsub.f32 %v727_v35, %v741_v58  ;;  %v743_v62 = vsub.f32 %v730_v30, %v741_v58 }
 0x223   :  { %v744_v2 = vmul.f32 1.442695, %v742_v60  ;;  %v746_v5 = vmul.f32 1.442695, %v743_v62 }
 0x225   :  { %1353 = vpow2.f32 %v744_v2 }
 0x226   :  { %1355 = vpow2.f32 %v746_v5 }
 0x228   :  { %1281 = vmatmul.msk.f32.gmra.mxu2 %vm254_vm1, %v801_v28 }
 0x22b   :  { %v1535_v13 = vpop.eup %1353 }
 0x22c   :  { %v1537_v15 = vpop.eup %1355  ;;  %v748_v19 = vsel %vm284_vm2, %v1535_v13, 0.0 }
 0x22d   :  { %v749_v20 = vsel %vm284_vm2, %v1537_v15, 0.0 }
 0x22e   :  { %v750_v28 = vadd.f32 %v749_v20, %v748_v19 }
 0x230   :  { %1286 = vmatmul.msk.f32.vlgmr.msra.gmra.mxu2 %vm254_vm1, %v1024_v29  ;;  %v751_v30 = vrot.slane %v750_v28, 4 }
 0x232   :  { %v752_v36 = vadd.f32 %v751_v30, %v750_v28 }
 0x234   :  { %v753_v52 = vrot.slane %v752_v36, 2 }
 0x236   :  { %v754_v2 = vadd.f32 %v753_v52, %v752_v36 }
 0x238   :  { %1287 = vmatmul.msk.f32.gmra.mxu2 %vm254_vm1, %v1025_v51 }
 0x245   :  { %v954_v39 = vpop.f32.mrf.mxu1 }
 0x246   :  { %v958_v42 = vsel %vm284_vm2, %v954_v39, -inf }
 0x247   :  { %v959_v54 = vmax.f32 %v957_v41, %v958_v42 }
 0x249   :  { %v960_v56 = vrot.slane %v959_v54, 4 }
 0x24b   :  { %v961_v59 = vmax.f32 %v959_v54, %v960_v56 }
 0x24d   :  { %v962_v61 = vrot.slane %v961_v59, 2 }
 0x24f   :  { %v963_v3 = vmax.f32 %v961_v59, %v962_v61 }
 0x251   :  { %v964_v7 = vrot.slane %v963_v3, 1 }
 0x253   :  { %v965_v11 = vmax.f32 %v963_v3, %v964_v7 }
 0x255   :  { %v966_v16 = vsub.f32 %v951_v34, %v965_v11  ;;  %v967_v18 = vsub.f32 %v954_v39, %v965_v11 }
 0x257   :  { %v968_v26 = vmul.f32 1.442695, %v966_v16  ;;  %v970_v29 = vmul.f32 1.442695, %v967_v18 }
 0x27b   :  { %v332_v32 = vpop.f32.mrf.mxu2 }
 0x27c   :  { %335 = vst.msk [vmem:[#allocation2] sm:$0xff] %vm284_vm2, %v332_v32 }
 0x285   :  { %v556_v38 = vpop.f32.mrf.mxu3 }
 0x286   :  { %559 = vst.msk [vmem:[#allocation2 + $0x10] sm:$0xff] %vm284_vm2, %v556_v38 }
 0x28b   :  { %v444_v43 = vpop.f32.mrf.mxu2 }
 0x28c   :  { %447 = vst.msk [vmem:[#allocation2 + $0x8] sm:$0xff] %vm284_vm2, %v444_v43 }
 0x293   :  { %v615_v57 = vpop.f32.mrf.mxu2 }
 0x294   :  { %v621_v0 = vsel %vm284_vm2, %v615_v57, -inf }
 0x29b   :  { %v618_v63 = vpop.f32.mrf.mxu2 }
 0x29c   :  { %v622_v1 = vsel %vm284_vm2, %v618_v63, -inf }
 0x29d   :  { %v623_v4 = vmax.f32 %v621_v0, %v622_v1 }
 0x29f   :  { %v624_v6 = vrot.slane %v623_v4, 4 }
 0x2a1   :  { %v625_v8 = vmax.f32 %v623_v4, %v624_v6 }
 0x2a3   :  { %v626_v9 = vrot.slane %v625_v8, 2  ;;  %v839_v10 = vpop.f32.mrf.mxu2 }
 0x2a4   :  { %v845_v24 = vsel %vm284_vm2, %v839_v10, -inf }
 0x2a5   :  { %v627_v12 = vmax.f32 %v625_v8, %v626_v9  ;;  %v755_v8 = vrot.slane %v754_v2, 1 }
 0x2a7   :  { %v628_v14 = vrot.slane %v627_v12, 1  ;;  %v756_v20 = vadd.f32 %v755_v8, %v754_v2 }
 0x2a9   :  { %v629_v17 = vmax.f32 %v627_v12, %v628_v14 }
 0x2ab   :  { %v630_v21 = vsub.f32 %v615_v57, %v629_v17  ;;  %v631_v22 = vsub.f32 %v618_v63, %v629_v17  ;;  %v842_v23 = vpop.f32.mrf.mxu2 }
 0x2ac   :  { %v846_v25 = vsel %vm284_vm2, %v842_v23, -inf }
 0x2ad   :  { %v632_v49 = vmul.f32 1.442695, %v630_v21  ;;  %v634_v27 = vmul.f32 1.442695, %v631_v22  ;;  %v847_v44 = vmax.f32 %v845_v24, %v846_v25 }
 0x2af   :  { %1357 = vpow2.f32 %v632_v49  ;;  %v848_v51 = vrot.slane %v847_v44, 4 }
 0x2b0   :  { %1359 = vpow2.f32 %v634_v27 }
 0x2b1   :  { %1361 = vpow2.f32 %v968_v26  ;;  %v849_v35 = vmax.f32 %v847_v44, %v848_v51 }
 0x2b2   :  { %1363 = vpow2.f32 %v970_v29 }
 0x2b3   :  { %v850_v31 = vrot.slane %v849_v35, 2  ;;  %v1063_v47 = vpop.f32.mrf.mxu2 }
 0x2b4   :  { %v1069_v61 = vsel %vm284_vm2, %v1063_v47, -inf }
 0x2b5   :  { %v1358_v32 = vpop.eup %1357  ;;  %v851_v33 = vmax.f32 %v849_v35, %v850_v31 }
 0x2b6   :  { %v1360_v34 = vpop.eup %1359  ;;  %v636_v37 = vsel %vm284_vm2, %v1358_v32, 0.0 }
 0x2b7   :  { %v1546_v38 = vpop.eup %1361  ;;  %v637_v39 = vsel %vm284_vm2, %v1360_v34, 0.0  ;;  %v852_v40 = vrot.slane %v851_v33, 1 }
 0x2b8   :  { %v1549_v41 = vpop.eup %1363  ;;  %v638_v42 = vadd.f32 %v637_v39, %v636_v37  ;;  %v972_v55 = vsel %vm284_vm2, %v1546_v38, 0.0 }
 0x2b9   :  { %v853_v43 = vmax.f32 %v851_v33, %v852_v40  ;;  %v973_v56 = vsel %vm284_vm2, %v1549_v41, 0.0 }
 0x2ba   :  { %v639_v54 = vrot.slane %v638_v42, 4  ;;  %v974_v3 = vadd.f32 %v973_v56, %v972_v55 }
 0x2bb   :  { %v854_v57 = vsub.f32 %v839_v10, %v853_v43  ;;  %v855_v58 = vsub.f32 %v842_v23, %v853_v43  ;;  %v1066_v59 = vpop.f32.mrf.mxu2 }
 0x2bc   :  { %v640_v60 = vadd.f32 %v639_v54, %v638_v42  ;;  %v1070_v62 = vsel %vm284_vm2, %v1066_v59, -inf  ;;  %v975_v9 = vrot.slane %v974_v3, 4 }
 0x2bd   :  { %v856_v63 = vmul.f32 1.442695, %v854_v57  ;;  %v858_v0 = vmul.f32 1.442695, %v855_v58  ;;  %v1071_v1 = vmax.f32 %v1069_v61, %v1070_v62 }
 0x2be   :  { %v641_v4 = vrot.slane %v640_v60, 2  ;;  %v976_v18 = vadd.f32 %v975_v9, %v974_v3 }
 0x2bf   :  { %1365 = vpow2.f32 %v856_v63  ;;  %v1072_v5 = vrot.slane %v1071_v1, 4 }
 0x2c0   :  { %v642_v6 = vadd.f32 %v641_v4, %v640_v60  ;;  %1367 = vpow2.f32 %v858_v0  ;;  %v977_v25 = vrot.slane %v976_v18, 2 }
 0x2c1   :  { %v1073_v7 = vmax.f32 %v1071_v1, %v1072_v5 }
 0x2c2   :  { %v643_v10 = vrot.slane %v642_v6, 1  ;;  %v978_v30 = vadd.f32 %v977_v25, %v976_v18  ;;  %v1321_v18 = vld [vmem:[%s1629_s1 + $0x60] sm:$0xff] }
 0x2c3   :  { %v1074_v11 = vrot.slane %v1073_v7, 2 }
 0x2c4   :  { %v644_v12 = vadd.f32 %v643_v10, %v642_v6  ;;  %v979_v40 = vrot.slane %v978_v30, 1 }
 0x2c5   :  { %v1366_v14 = vpop.eup %1365  ;;  %v1075_v16 = vmax.f32 %v1073_v7, %v1074_v11  ;;  %v1122_v11 = vld [vmem:[#allocation2 + $0x10] sm:$0xff] }
 0x2c6   :  { %v1368_v17 = vpop.eup %1367  ;;  %v860_v19 = vsel %vm284_vm2, %v1366_v14, 0.0  ;;  %1369 = vrcp.f32 %v644_v12  ;;  %v980_v54 = vadd.f32 %v979_v40, %v978_v30 }
 0x2c7   :  { %v861_v21 = vsel %vm284_vm2, %v1368_v17, 0.0  ;;  %v1076_v22 = vrot.slane %v1075_v16, 1  ;;  %1371 = vrcp.f32 %v756_v20  ;;  %v1323_v20 = vld [vmem:[%s1629_s1 + $0x70] sm:$0xff] }
 0x2c8   :  { %v862_v23 = vadd.f32 %v861_v21, %v860_v19  ;;  %v1322_v19 = vld [vmem:[%s1629_s1 + $0x68] sm:$0xff]  ;;  %v1324_v21 = vld [vmem:[%s1629_s1 + $0x78] sm:$0xff] }
 0x2c9   :  { %v1077_v24 = vmax.f32 %v1075_v16, %v1076_v22  ;;  %v1120_v16 = vld [vmem:[#allocation2] sm:$0xff] }
 0x2ca   :  { %v863_v26 = vrot.slane %v862_v23, 4 }
 0x2cb   :  { %v1078_v49 = vsub.f32 %v1063_v47, %v1077_v24  ;;  %v1079_v27 = vsub.f32 %v1066_v59, %v1077_v24 }
 0x2cc   :  { %v1370_v44 = vpop.eup %1369  ;;  %v864_v28 = vadd.f32 %v863_v26, %v862_v23 }
 0x2cd   :  { %v1080_v29 = vmul.f32 1.442695, %v1078_v49  ;;  %v1082_v51 = vmul.f32 1.442695, %v1079_v27  ;;  %v647_v35 = vmul.f32 %v1370_v44, %v1360_v34  ;;  %v646_v33 = vmul.f32 %v1370_v44, %v1358_v32  ;;  %v1372_v36 = vpop.eup %1371 }
 0x2ce   :  { %v865_v31 = vrot.slane %v864_v28, 2  ;;  %v759_v39 = vmul.f32 %v1372_v36, %v1537_v15  ;;  %v758_v47 = vmul.f32 %v1372_v36, %v1535_v13 }
 0x2cf   :  { %1373 = vpow2.f32 %v1080_v29  ;;  %665 = vmatpush.msrb.mxu3 %v647_v35 }
 0x2d0   :  { %v866_v37 = vadd.f32 %v865_v31, %v864_v28  ;;  %1375 = vpow2.f32 %v1082_v51 }
 0x2d1   :  { %666 = vmatpush.msrb.mxu3 %v646_v33 }
 0x2d2   :  { %v867_v42 = vrot.slane %v866_v37, 1  ;;  %1276 = vmatmul.msk.f32.vlgmr.msrb.gmra.mxu3 %vm284_vm2, %v1480_v45 }
 0x2d3   :  { %777 = vmatpush.msra.mxu3 %v759_v39 }
 0x2d4   :  { %v868_v34 = vadd.f32 %v867_v42, %v866_v37 }
 0x2d5   :  { %v1374_v43 = vpop.eup %1373  ;;  %778 = vmatpush.msra.mxu3 %v758_v47 }
 0x2d6   :  { %v1376_v52 = vpop.eup %1375  ;;  %v1084_v32 = vsel %vm284_vm2, %v1374_v43, 0.0  ;;  %1377 = vrcp.f32 %v868_v34 }
 0x2d7   :  { %v1085_v55 = vsel %vm284_vm2, %v1376_v52, 0.0  ;;  %1379 = vrcp.f32 %v980_v54 }
 0x2d8   :  { %v1086_v56 = vadd.f32 %v1085_v55, %v1084_v32 }
 0x2da   :  { %v1087_v15 = vrot.slane %v1086_v56, 4  ;;  %1279 = vmatmul.msk.f32.vlgmr.msra.gmra.mxu3 %vm284_vm2, %v1482_v46 }
 0x2dc   :  { %v1378_v45 = vpop.eup %1377  ;;  %v1088_v57 = vadd.f32 %v1087_v15, %v1086_v56 }
 0x2dd   :  { %v871_v58 = vmul.f32 %v1378_v45, %v1368_v17  ;;  %v870_v59 = vmul.f32 %v1378_v45, %v1366_v14  ;;  %v1380_v60 = vpop.eup %1379  ;;  %v1121_v14 = vld [vmem:[#allocation2 + $0x8] sm:$0xff] }
 0x2de   :  { %v1089_v13 = vrot.slane %v1088_v57, 2  ;;  %v983_v62 = vmul.f32 %v1380_v60, %v1549_v41  ;;  %v982_v0 = vmul.f32 %v1380_v60, %v1546_v38  ;;  %v1128_v17 = vpack.c.bf16 %v1121_v14, %v1120_v16 }
 0x2df   :  { %889 = vmatpush.msrb.mxu3 %v871_v58 }
 0x2e0   :  { %v1090_v61 = vadd.f32 %v1089_v13, %v1088_v57 }
 0x2e1   :  { %890 = vmatpush.msrb.mxu3 %v870_v59 }
 0x2e2   :  { %v1091_v63 = vrot.slane %v1090_v61, 1  ;;  %1282 = vmatmul.msk.f32.vlgmr.msrb.gmra.mxu3 %vm284_vm2, %v1486_v48 }
 0x2e3   :  { %1001 = vmatpush.msra.mxu3 %v983_v62 }
 0x2e4   :  { %v1092_v46 = vadd.f32 %v1091_v63, %v1090_v61 }
 0x2e5   :  { %1002 = vmatpush.msra.mxu3 %v982_v0 }
 0x2e6   :  { %1381 = vrcp.f32 %v1092_v46 }
 0x2ea   :  { %1285 = vmatmul.msk.f32.vlgmr.msra.gmra.mxu3 %vm284_vm2, %v1490_v50 }
 0x2ec   :  { %v1382_v1 = vpop.eup %1381 }
 0x2ed   :  { %v1095_v2 = vmul.f32 %v1382_v1, %v1376_v52  ;;  %v1094_v3 = vmul.f32 %v1382_v1, %v1374_v43 }
 0x2ef   :  { %1113 = vmatpush.msrb.mxu3 %v1095_v2 }
 0x2f1   :  { %1114 = vmatpush.msrb.mxu3 %v1094_v3 }
 0x2f2   :  { %1288 = vmatmul.msk.f32.vlgmr.msrb.gmra.mxu3 %vm284_vm2, %v1494_v53 }
 0x355   :  { %v668_v41 = vpop.f32.mrf.mxu3 }
 0x356   :  { %671 = vst.msk [vmem:[#allocation2 + $0x18] sm:$0xff] %vm284_vm2, %v668_v41 }
 0x35d   :  { %v780_v48 = vpop.f32.mrf.mxu3  ;;  %v1123_v10 = vld [vmem:[#allocation2 + $0x18] sm:$0xff] }
 0x35e   :  { %783 = vst.msk [vmem:[#allocation2 + $0x20] sm:$0xff] %vm284_vm2, %v780_v48  ;;  %v1129_v12 = vpack.c.bf16 %v1123_v10, %v1122_v11 }
 0x365   :  { %v892_v38 = vpop.f32.mrf.mxu3  ;;  %v1124_v53 = vld [vmem:[#allocation2 + $0x20] sm:$0xff] }
 0x366   :  { %895 = vst.msk [vmem:[#allocation2 + $0x28] sm:$0xff] %vm284_vm2, %v892_v38 }
 0x36d   :  { %v1004_v4 = vpop.f32.mrf.mxu3  ;;  %v1125_v8 = vld [vmem:[#allocation2 + $0x28] sm:$0xff] }
 0x36e   :  { %1007 = vst.msk [vmem:[#allocation2 + $0x30] sm:$0xff] %vm284_vm2, %v1004_v4  ;;  %v1130_v9 = vpack.c.bf16 %v1125_v8, %v1124_v53 }
 0x375   :  { %v1116_v50 = vpop.f32.mrf.mxu3  ;;  %v1126_v5 = vld [vmem:[#allocation2 + $0x30] sm:$0xff] }
 0x376   :  { %1119 = vst.msk [vmem:[#allocation2 + $0x38] sm:$0xff] %vm284_vm2, %v1116_v50 }
 0x37d   :  { %v1127_v6 = vld [vmem:[#allocation2 + $0x38] sm:$0xff] }
 0x37e   :  { %v1131_v7 = vpack.c.bf16 %v1127_v6, %v1126_v5 }
 0x380   :  { %1168 = vmatpush.bf16.msra.mxu1 %v1131_v7 }
 0x384   :  { %1169 = vmatpush.bf16.msra.mxu1 %v1130_v9 }
 0x388   :  { %1170 = vmatpush.bf16.msra.mxu1 %v1129_v12 }
 0x38c   :  { %1171 = vmatpush.bf16.msra.mxu1 %v1128_v17 }
 0x38f   :  { %1305 = vmatmul.msk.bf16.vlgmr.msra.gmra.mxu1 %vm116_vm0, %v1321_v18 }
 0x39f   :  { %1306 = vmatmul.msk.bf16.gmra.mxu1 %vm116_vm0, %v1322_v19 }
 0x3af   :  { %1307 = vmatmul.msk.bf16.gmra.mxu1 %vm116_vm0, %v1323_v20 }
 0x3bf   :  { %1308 = vmatmul.msk.bf16.gmra.mxu1 %vm116_vm0, %v1324_v21 }
 0x40c   :  { %v1173_v22 = vpop.f32.mrf.mxu1 }
 0x40d   :  { %1193 = vst.msk [vmem:[%s1630_s2] sm:$0xff] %vm284_vm2, %v1173_v22 }
 0x414   :  { %v1175_v23 = vpop.f32.mrf.mxu1 }
 0x415   :  { %1194 = vst.msk [vmem:[%s1630_s2 + $0x8] sm:$0xff] %vm284_vm2, %v1175_v23 }
 0x41c   :  { %v1178_v24 = vpop.f32.mrf.mxu1 }
 0x41d   :  { %1195 = vst.msk [vmem:[%s1630_s2 + $0x10] sm:$0xff] %vm284_vm2, %v1178_v24 }
 0x424   :  { %v1180_v25 = vpop.f32.mrf.mxu1 }
 0x425   :  { %1196 = vst.msk [vmem:[%s1630_s2 + $0x18] sm:$0xff] %vm284_vm2, %v1180_v25 }
 0x42c   :  { %v1183_v26 = vpop.f32.mrf.mxu1 }
 0x42d   :  { %1197 = vst.msk [vmem:[%s1630_s2 + $0x20] sm:$0xff] %vm284_vm2, %v1183_v26 }
 0x434   :  { %v1185_v49 = vpop.f32.mrf.mxu1 }
 0x435   :  { %1198 = vst.msk [vmem:[%s1630_s2 + $0x28] sm:$0xff] %vm284_vm2, %v1185_v49 }
 0x43c   :  { %v1188_v27 = vpop.f32.mrf.mxu1 }
 0x43d   :  { %1199 = vst.msk [vmem:[%s1630_s2 + $0x30] sm:$0xff] %vm284_vm2, %v1188_v27 }
 0x444   :  { %v1190_v44 = vpop.f32.mrf.mxu1 }
 0x445   :  { %1200 = vst.msk [vmem:[%s1630_s2 + $0x38] sm:$0xff] %vm284_vm2, %v1190_v44 }

</bundles_post_ra>
